<compile_context>
chip_gen: v5e
topology: v5e:2x2
jax: 0.10.0
libtpu: 0.0.40
codegen_flags: <defaults>
</compile_context>

<pallas_src>
import functools

import jax
import jax.numpy as jnp
from jax.experimental import pallas as pl
from jax.experimental.pallas import tpu as pltpu


def _round_up(x, m):
    return (x + m - 1) // m * m


def _textcnn_kernel(k_max, x_ref, w_ref, b_ref, mask_ref, fcw_ref, fcb_ref,
                    out_ref):
    """Fused im2col-conv (all filter widths packed) + ReLU + max-pool + fc.

    x_ref:    [TB, L_pad, D]      bf16 embedded (time zero-padded) batch tile
    w_ref:    [k_max*D, Fp]       bf16 packed conv weight (all branches)
    b_ref:    [1, Fp]             f32  packed conv bias
    mask_ref: [T, Fp]             f32  0/1 per-branch time-validity mask
    fcw_ref:  [Fp, OUTp]          bf16 packed fc weight
    fcb_ref:  [1, OUTp]           f32  fc bias
    out_ref:  [TB, OUTp]          f32
    """
    TB, L_pad, D = x_ref.shape
    T, Fp = mask_ref.shape

    # im2col: window of k_max consecutive rows per time step, folded into the
    # matmul contraction dim -> [TB*T, k_max*D].
    slab = jnp.concatenate(
        [x_ref[:, pl.ds(j, T), :] for j in range(k_max)], axis=-1)
    slab = slab.reshape(TB * T, k_max * D)

    # One conv matmul for every branch at once (K = k_max*D, N = Fp).
    s = jnp.dot(slab, w_ref[...], preferred_element_type=jnp.float32)
    s = jnp.maximum(s + b_ref[...], 0.0)                 # bias + ReLU (f32)
    # Post-ReLU everything is >= 0, so zeroing invalid (partial-window /
    # time-padded) positions cannot change the max over valid positions.
    s = s.reshape(TB, T, Fp) * mask_ref[...][None, :, :]
    pooled = jnp.max(s, axis=1)                          # [TB, Fp]

    out = jnp.dot(pooled.astype(jnp.bfloat16), fcw_ref[...],
                  preferred_element_type=jnp.float32)
    out_ref[...] = out + fcb_ref[...]


def textcnn_forward(text, embedding, conv_ws, conv_bs, fc_w, fc_b,
                    filter_sizes, num_classes, polarities_dim, batch_tile=64):
    # TODO(synk): embedding gather kept in plain JAX; fusing it into the kernel
    # (scalar-prefetch row gather / manual DMA) would cut the extra HBM
    # write+read of x for realistic embed dims.
    x = jnp.take(embedding, text, axis=0).astype(jnp.bfloat16)   # [B, L, D]
    B, L, D = x.shape
    filter_sizes = tuple(int(k) for k in filter_sizes)
    k_max, k_min = max(filter_sizes), min(filter_sizes)
    assert L >= k_max, "sequence shorter than the largest filter"

    n = len(filter_sizes)
    F = conv_ws[0].shape[-1]
    out_dim = fc_w.shape[1]

    # Lane-dense packing: all n*F filters share one 128-lane slab.
    Fp = _round_up(n * F, 128)
    OUTp = _round_up(out_dim, 128)
    # Pool length padded to a sublane multiple; x padded in time accordingly.
    T = _round_up(L - k_min + 1, 8)
    L_pad = T + k_max - 1

    w_packed = jnp.zeros((k_max, D, Fp), jnp.float32)
    b_packed = jnp.zeros((1, Fp), jnp.float32)
    t_mask = jnp.zeros((T, Fp), jnp.float32)
    fc_w_packed = jnp.zeros((Fp, OUTp), jnp.float32)
    for i, k in enumerate(filter_sizes):
        lanes = slice(i * F, (i + 1) * F)
        w_packed = w_packed.at[:k, :, lanes].set(conv_ws[i].astype(jnp.float32))
        b_packed = b_packed.at[:, lanes].set(conv_bs[i].astype(jnp.float32))
        t_mask = t_mask.at[:L - k + 1, lanes].set(1.0)    # valid time positions
        fc_w_packed = fc_w_packed.at[lanes, :out_dim].set(
            fc_w[i * F:(i + 1) * F, :].astype(jnp.float32))
    w_packed = w_packed.reshape(k_max * D, Fp).astype(jnp.bfloat16)
    fc_w_packed = fc_w_packed.astype(jnp.bfloat16)
    fc_b_p = jnp.pad(fc_b.astype(jnp.float32), ((0, 0), (0, OUTp - out_dim)))

    # Batch tile: multiple of 8 (sublane-aligned M, unmasked output stores).
    TB = _round_up(max(1, min(batch_tile, B)), 8)
    # Keep the grid >= 2 steps when the batch allows (v7x has 2 TensorCores).
    if B > 8 and _round_up(B, TB) // TB < 2:
        TB = _round_up((B + 1) // 2, 8)
    Bp = _round_up(B, TB)

    x = jnp.pad(x, ((0, Bp - B), (0, L_pad - L), (0, 0)))
    grid = (Bp // TB,)

    kernel = functools.partial(_textcnn_kernel, k_max)

    out = pl.pallas_call(
        kernel,
        out_shape=jax.ShapeDtypeStruct((Bp, OUTp), jnp.float32),
        grid=grid,
        in_specs=[
            pl.BlockSpec((TB, L_pad, D), lambda b: (b, 0, 0)),
            pl.BlockSpec(w_packed.shape, lambda b: (0, 0)),
            pl.BlockSpec(b_packed.shape, lambda b: (0, 0)),
            pl.BlockSpec(t_mask.shape, lambda b: (0, 0)),
            pl.BlockSpec(fc_w_packed.shape, lambda b: (0, 0)),
            pl.BlockSpec(fc_b_p.shape, lambda b: (0, 0)),
        ],
        out_specs=pl.BlockSpec((TB, OUTp), lambda b: (b, 0)),
        compiler_params=pltpu.CompilerParams(
            dimension_semantics=("parallel",),
            # Above the v5e 16 MiB / v6e 32 MiB scoped defaults, with headroom
            # inside v7x's 64 MiB physical VMEM for the double-buffered x tile
            # plus the im2col / epilogue slabs at the default TB.
            vmem_limit_bytes=48 * 1024 * 1024),
    )(x, w_packed, b_packed, t_mask, fc_w_packed, fc_b_p)

    out = out[:B, :out_dim]
    # TODO(synk): nn.Dropout is a training-time stochastic op; eval-mode identity here.
    return out.reshape(B, num_classes, polarities_dim)


def textcnn_reference(text, embedding, conv_ws, conv_bs, fc_w, fc_b,
                      filter_sizes, num_classes, polarities_dim):
    """Pure-JAX f32 reference mirroring the PyTorch forward."""
    x = jnp.take(embedding, text, axis=0).astype(jnp.float32)   # [B, L, D]
    L = x.shape[1]
    feats = []
    for w, b, k in zip(conv_ws, conv_bs, filter_sizes):
        T = L - k + 1
        s = sum(jnp.einsum('btd,df->btf', x[:, j:j + T, :], w[j].astype(jnp.float32))
                for j in range(k)) + b[0]
        feats.append(jnp.max(jax.nn.relu(s), axis=1))           # [B, F]
    feat = jnp.concatenate(feats, axis=1)
    out = feat @ fc_w + fc_b[0]
    return out.reshape(-1, num_classes, polarities_dim)


if __name__ == "__main__":
    # Small, deterministic config.
    B, L = 4, 16                 # batch, sequence length
    vocab, D = 20, 32            # vocab size, embed_dim
    num_filters = 8
    filter_sizes = (2, 3, 4)
    num_classes, polarities_dim = 3, 3
    out_dim = num_classes * polarities_dim
    in_dim = num_filters * len(filter_sizes)

    key = jax.random.PRNGKey(0)
    keys = jax.random.split(key, 4 + 2 * len(filter_sizes))
    k_txt, k_emb, k_fcw, k_fcb = keys[:4]
    k_conv = keys[4:]

    text = jax.random.randint(k_txt, (B, L), 0, vocab, dtype=jnp.int32)
    embedding = jax.random.normal(k_emb, (vocab, D), dtype=jnp.float32) * 0.1

    conv_ws, conv_bs = [], []
    for i, kk in enumerate(filter_sizes):
        conv_ws.append(jax.random.normal(k_conv[2 * i], (kk, D, num_filters),
                                         dtype=jnp.float32) * 0.1)
        conv_bs.append(jax.random.normal(k_conv[2 * i + 1], (1, num_filters),
                                         dtype=jnp.float32) * 0.1)
    fc_w = jax.random.normal(k_fcw, (in_dim, out_dim), dtype=jnp.float32) * 0.1
    fc_b = jax.random.normal(k_fcb, (1, out_dim), dtype=jnp.float32) * 0.1

    out = textcnn_forward(text, embedding, conv_ws, conv_bs, fc_w, fc_b,
                          filter_sizes, num_classes, polarities_dim,
                          batch_tile=64)
    out = jax.block_until_ready(out)

    ref = textcnn_reference(text, embedding, conv_ws, conv_bs, fc_w, fc_b,
                            filter_sizes, num_classes, polarities_dim)
    assert out.shape == (B, num_classes, polarities_dim), out.shape
    # bf16 MXU inputs (f32 accumulation) -> slightly looser tolerance vs f32 ref.
    assert jnp.allclose(out, ref, atol=2e-2, rtol=2e-2), (out, ref)

    print("KERNEL_OK")
</pallas_src>

<mosaic_0001>
module attributes {stable_mosaic.version = 11 : i64} {
  func.func @_textcnn_kernel(%arg0: i32, %arg1: memref<8x19x32xbf16, #tpu.memory_space<vmem>>, %arg2: memref<128x128xbf16, #tpu.memory_space<vmem>>, %arg3: memref<1x128xf32, #tpu.memory_space<vmem>>, %arg4: memref<16x128xf32, #tpu.memory_space<vmem>>, %arg5: memref<128x128xbf16, #tpu.memory_space<vmem>>, %arg6: memref<1x128xf32, #tpu.memory_space<vmem>>, %arg7: memref<8x128xf32, #tpu.memory_space<vmem>>) attributes {dimension_semantics = [#tpu.dimension_semantics<parallel>], iteration_bounds = array<i64: 1>, scalar_prefetch = 0 : i64, scratch_operands = 0 : i64, tpu.core_type = #tpu.core_type<tc>, window_params = [{transform_indices = @transform_0, window_bounds = array<i64: 8, 19, 32>}, {pipeline_mode = #tpu.pipeline_mode<synchronous>, transform_indices = @transform_1, window_bounds = array<i64: 128, 128>}, {pipeline_mode = #tpu.pipeline_mode<synchronous>, transform_indices = @transform_2, window_bounds = array<i64: 1, 128>}, {pipeline_mode = #tpu.pipeline_mode<synchronous>, transform_indices = @transform_3, window_bounds = array<i64: 16, 128>}, {pipeline_mode = #tpu.pipeline_mode<synchronous>, transform_indices = @transform_4, window_bounds = array<i64: 128, 128>}, {pipeline_mode = #tpu.pipeline_mode<synchronous>, transform_indices = @transform_5, window_bounds = array<i64: 1, 128>}, {transform_indices = @transform_6, window_bounds = array<i64: 8, 128>}]} {
    %c0 = arith.constant 0 : index
    %c0_0 = arith.constant 0 : index
    %c0_1 = arith.constant 0 : index
    %0 = vector.load %arg1[%c0, %c0_0, %c0_1] : memref<8x19x32xbf16, #tpu.memory_space<vmem>>, vector<8x16x32xbf16>
    %c0_2 = arith.constant 0 : index
    %c1 = arith.constant 1 : index
    %c0_3 = arith.constant 0 : index
    %1 = vector.load %arg1[%c0_2, %c1, %c0_3] : memref<8x19x32xbf16, #tpu.memory_space<vmem>>, vector<8x16x32xbf16>
    %c0_4 = arith.constant 0 : index
    %c2 = arith.constant 2 : index
    %c0_5 = arith.constant 0 : index
    %2 = vector.load %arg1[%c0_4, %c2, %c0_5] : memref<8x19x32xbf16, #tpu.memory_space<vmem>>, vector<8x16x32xbf16>
    %c0_6 = arith.constant 0 : index
    %c3 = arith.constant 3 : index
    %c0_7 = arith.constant 0 : index
    %3 = vector.load %arg1[%c0_6, %c3, %c0_7] : memref<8x19x32xbf16, #tpu.memory_space<vmem>>, vector<8x16x32xbf16>
    %4 = tpu.concatenate %0, %1, %2, %3 in 2 : vector<8x16x32xbf16>, vector<8x16x32xbf16>, vector<8x16x32xbf16>, vector<8x16x32xbf16> -> vector<8x16x128xbf16>
    %5 = vector.shape_cast %4 : vector<8x16x128xbf16> to vector<128x128xbf16>
    %c0_8 = arith.constant 0 : index
    %c0_9 = arith.constant 0 : index
    %6 = vector.load %arg2[%c0_8, %c0_9] : memref<128x128xbf16, #tpu.memory_space<vmem>>, vector<128x128xbf16>
    %cst = arith.constant dense<0.000000e+00> : vector<128x128xf32>
    %7 = tpu.matmul %5, %6, %cst {dimension_numbers = #tpu.dot_dimension_numbers<[1], [0], [0], [1], [0, 0, 1, 1], [], []>} : vector<128x128xbf16>, vector<128x128xbf16>, vector<128x128xf32> -> vector<128x128xf32>
    %c0_10 = arith.constant 0 : index
    %c0_11 = arith.constant 0 : index
    %8 = vector.load %arg3[%c0_10, %c0_11] : memref<1x128xf32, #tpu.memory_space<vmem>>, vector<1x128xf32>
    %9 = vector.broadcast %8 : vector<1x128xf32> to vector<128x128xf32>
    %10 = arith.addf %7, %9 : vector<128x128xf32>
    %cst_12 = arith.constant 0.000000e+00 : f32
    %11 = vector.broadcast %cst_12 : f32 to vector<128x128xf32>
    %12 = arith.maximumf %10, %11 : vector<128x128xf32>
    %13 = vector.shape_cast %12 : vector<128x128xf32> to vector<8x16x128xf32>
    %c0_13 = arith.constant 0 : index
    %c0_14 = arith.constant 0 : index
    %14 = vector.load %arg4[%c0_13, %c0_14] : memref<16x128xf32, #tpu.memory_space<vmem>>, vector<16x128xf32>
    %15 = vector.shape_cast %14 : vector<16x128xf32> to vector<1x16x128xf32>
    %16 = vector.broadcast %15 : vector<1x16x128xf32> to vector<8x16x128xf32>
    %17 = arith.mulf %13, %16 : vector<8x16x128xf32>
    %cst_15 = arith.constant dense<0xFF800000> : vector<8x128xf32>
    %18 = vector.multi_reduction <maximumf>, %17, %cst_15 [1] : vector<8x16x128xf32> to vector<8x128xf32>
    %19 = arith.truncf %18 : vector<8x128xf32> to vector<8x128xbf16>
    %c0_16 = arith.constant 0 : index
    %c0_17 = arith.constant 0 : index
    %20 = vector.load %arg5[%c0_16, %c0_17] : memref<128x128xbf16, #tpu.memory_space<vmem>>, vector<128x128xbf16>
    %cst_18 = arith.constant dense<0.000000e+00> : vector<8x128xf32>
    %21 = tpu.matmul %19, %20, %cst_18 {dimension_numbers = #tpu.dot_dimension_numbers<[1], [0], [0], [1], [0, 0, 1, 1], [], []>} : vector<8x128xbf16>, vector<128x128xbf16>, vector<8x128xf32> -> vector<8x128xf32>
    %c0_19 = arith.constant 0 : index
    %c0_20 = arith.constant 0 : index
    %22 = vector.load %arg6[%c0_19, %c0_20] : memref<1x128xf32, #tpu.memory_space<vmem>>, vector<1x128xf32>
    %23 = vector.broadcast %22 : vector<1x128xf32> to vector<8x128xf32>
    %24 = arith.addf %21, %23 : vector<8x128xf32>
    %c0_21 = arith.constant 0 : index
    %c0_22 = arith.constant 0 : index
    %25 = vector.load %arg7[%c0_21, %c0_22] : memref<8x128xf32, #tpu.memory_space<vmem>>, vector<8x128xf32>
    tpu.vector_store %arg7[%c0_21, %c0_22], %24 {strides = array<i32>} : memref<8x128xf32, #tpu.memory_space<vmem>>, vector<8x128xf32>,
    return
  }
  func.func @transform_0(%arg0: i32) -> (i32, i32, i32) {
    %c0_i32 = arith.constant 0 : i32
    %c0_i32_0 = arith.constant 0 : i32
    %c0_i32_1 = arith.constant 0 : i32
    return %arg0, %c0_i32, %c0_i32_0 : i32, i32, i32
  }
  func.func @transform_1(%arg0: i32) -> (i32, i32) {
    %c0_i32 = arith.constant 0 : i32
    %c0_i32_0 = arith.constant 0 : i32
    %c0_i32_1 = arith.constant 0 : i32
    return %c0_i32, %c0_i32_0 : i32, i32
  }
  func.func @transform_2(%arg0: i32) -> (i32, i32) {
    %c0_i32 = arith.constant 0 : i32
    %c0_i32_0 = arith.constant 0 : i32
    %c0_i32_1 = arith.constant 0 : i32
    return %c0_i32, %c0_i32_0 : i32, i32
  }
  func.func @transform_3(%arg0: i32) -> (i32, i32) {
    %c0_i32 = arith.constant 0 : i32
    %c0_i32_0 = arith.constant 0 : i32
    %c0_i32_1 = arith.constant 0 : i32
    return %c0_i32, %c0_i32_0 : i32, i32
  }
  func.func @transform_4(%arg0: i32) -> (i32, i32) {
    %c0_i32 = arith.constant 0 : i32
    %c0_i32_0 = arith.constant 0 : i32
    %c0_i32_1 = arith.constant 0 : i32
    return %c0_i32, %c0_i32_0 : i32, i32
  }
  func.func @transform_5(%arg0: i32) -> (i32, i32) {
    %c0_i32 = arith.constant 0 : i32
    %c0_i32_0 = arith.constant 0 : i32
    %c0_i32_1 = arith.constant 0 : i32
    return %c0_i32, %c0_i32_0 : i32, i32
  }
  func.func @transform_6(%arg0: i32) -> (i32, i32) {
    %c0_i32 = arith.constant 0 : i32
    %c0_i32_0 = arith.constant 0 : i32
    return %arg0, %c0_i32 : i32, i32
  }
}

</mosaic_0001>

<bundles_post_ra>
// kernel: tpu_custom_call.1
= control target key start
LH: loop header
LB: loop body
LE: loop exit
PB: predicated region body
PF: predicated region fallthrough
CT: control target
= control target key end

     0   :  { %vm265_vm0 = vcmask 1046528   ;;  %vm330_vm1 = vsmask.f32 6400  ;;  %s1058_s19 = smov 64   ;;  %vm128_vm2 = vsmask.f32 7424  ;;  %s1490_s0 = inlined_call_operand.vmem [shape: bf16[8,19,32], index: 0, kind: input, shape index: {}]   ;;  %s1491_s1 = inlined_call_operand.vmem [shape: bf16[128,128], index: 1, kind: input, shape index: {}]   ;;  %s1492_s2 = inlined_call_operand.vmem [shape: f32[1,128], index: 2, kind: input, shape index: {}]   ;;  %s1493_s3 = inlined_call_operand.vmem [shape: f32[16,128], index: 3, kind: input, shape index: {}]   ;;  %s1494_s4 = inlined_call_operand.vmem [shape: bf16[128,128], index: 4, kind: input, shape index: {}]   ;;  %s1495_s5 = inlined_call_operand.vmem [shape: f32[1,128], index: 5, kind: input, shape index: {}]   ;;  %s1496_s6 = inlined_call_operand.hbm [shape: f32[8,128], index: 6, kind: output, shape index: {}]  }
   0x1   :  { %v989_v0 = vld [vmem:[%s1490_s0 + $0x18] sm:$0xf0]  ;;  %v42_v1 = vld [vmem:[%s1490_s0 + $0x20] sm:$0x1]  ;;  %v990_v2 = vld [vmem:[%s1490_s0 + $0x18] sm:$0xe] }
   0x2   :  { %v114_v3 = vunpack.c.l.b16 %v42_v1  ;;  %v991_v4 = vor.u32 %v990_v2, %v989_v0  ;;  %v58_v5 = vld [vmem:[%s1490_s0 + $0x20] sm:$0x3]  ;;  %v1112_v7 = vld [vmem:[%s1490_s0 + $0x18] sm:$0xff]   ;;  %v45_v17 = vld [vmem:[%s1490_s0 + $0x44] sm:$0x1]  ;;  %s1059_s26 = smov 96  }
   0x3   :  { %v316_v6 = vunpack.c.l.b16 %v58_v5  ;;  %v1117_v8 = vld [vmem:[%s1490_s0 + $0x3c] sm:$0xff]   ;;  %v154_v15 = vshrl.u32 %v1112_v7, 16  ;;  %v156_v16 = vshll.u32 %v1112_v7, 16  ;;  %v1130_v25 = vld [vmem:[%s1490_s0 + $0x24] sm:$0xff]   ;;  %v43_v27 = vld [vmem:[%s1490_s0 + $0x2c] sm:$0x1]  ;;  %v117_v31 = vunpack.c.l.b16 %v45_v17 }
   0x4   :  { %v1023_v9 = vld [vmem:[%s1490_s0 + $0x3c] sm:$0xf0]  ;;  %v122_v10 = vpack.c.b16 %v114_v3, %v114_v3  ;;  %v272_v11 = vrot.slane %v991_v4, 1  ;;  %v366_v12 = vshrl.u32 %v991_v4, 16  ;;  %v369_v13 = vshll.u32 %v991_v4, 16 }
   0x5   :  { %v324_v14 = vpack.c.b16 %v316_v6, %v316_v6  ;;  %v158_v24 = vrot.slane %v156_v16, 1  ;;  %v1020_v26 = vld [vmem:[%s1490_s0 + $0x24] sm:$0xf0]  ;;  %v125_v35 = vpack.c.b16 %v117_v31, %v117_v31  ;;  %v115_v36 = vunpack.c.l.b16 %v43_v27  ;;  %v1021_v37 = vld [vmem:[%s1490_s0 + $0x24] sm:$0xe] }
   0x6   :  { %v273_v18 = vrot.slane %v122_v10, 1  ;;  %v368_v19 = vrot.slane %v366_v12, 1  ;;  %v371_v20 = vrot.slane %v369_v13, 2  ;;  %v161_v21 = vshll.u32 %v122_v10, 16  ;;  %v40_v38 = vld [vmem:[%s1490_s0 + $0x8] sm:$0x1] }
   0x7   :  { %v374_v22 = vshrl.u32 %v324_v14, 16  ;;  %v377_v23 = vshll.u32 %v324_v14, 16  ;;  %v159_v34 = vor.u32 %v158_v24, %v154_v15  ;;  %v190_v40 = vshrl.u32 %v1117_v8, 16  ;;  %v1024_v44 = vld [vmem:[%s1490_s0 + $0x3c] sm:$0xe]  ;;  %v1162_v52 = vld [vmem:[%s1490_s0] sm:$0xff]  }
   0x8   :  { %v274_v28 = vsel %vm265_vm0, %v272_v11, %v273_v18  ;;  %v372_v29 = vor.u32 %v371_v20, %v368_v19  ;;  %v163_v30 = vrot.slane %v161_v21, 1  ;;  %v192_v41 = vshll.u32 %v1117_v8, 16  ;;  %v46_v55 = vld [vmem:[%s1490_s0 + $0x50] sm:$0x1] }
   0x9   :  { %294 = vrot.lane.b32.xlu0 %v274_v28, %s1058_s19  ;;  %v376_v32 = vrot.slane %v374_v22, 1  ;;  %v379_v33 = vrot.slane %v377_v23, 2  ;;  %v197_v42 = vshll.u32 %v125_v35, 16  ;;  %v1148_v43 = vpack.c.b16 %v115_v36, %v115_v36 }
   0xa   :  { %v194_v46 = vrot.slane %v192_v41, 1  ;;  %v112_v47 = vunpack.c.l.b16 %v40_v38  ;;  %v164_v48 = vsel %vm128_vm2, %v159_v34, %v163_v30  ;;  %v166_v49 = vshrl.u32 %v1130_v25, 16 }
   0xb   :  { %v380_v39 = vor.u32 %v379_v33, %v376_v32  ;;  %v168_v50 = vshll.u32 %v1130_v25, 16  ;;  %v173_v51 = vshll.u32 %v1148_v43, 16  ;;  %v199_v54 = vrot.slane %v197_v42, 1 }
   0xc   :  { %v195_v53 = vor.u32 %v194_v46, %v190_v40 }
   0xd   :  { %v381_v45 = vsel %vm330_vm1, %v372_v29, %v380_v39 }
   0xe   :  { %471 = vrot.lane.b32.xlu1 %v381_v45, %s1059_s26 }
   0xf   :  { %11 = vsyncpa [#allocation3], 0  ;;  %v170_v56 = vrot.slane %v168_v50, 1  ;;  %v1170_v57 = vld [vmem:[%s1490_s0 + $0x48] sm:$0xff]   ;;  %s1060_s9 = smov 32   ;;  %v175_v58 = vrot.slane %v173_v51, 1  ;;  %v1173_v59 = vor.u32 %v1021_v37, %v1020_v26  ;;  %v1175_v60 = vpack.c.b16 %v112_v47, %v112_v47 }
  0x10   :  { %v132_v61 = vshll.u32 %v1162_v52, 16  ;;  %v1025_v63 = vor.u32 %v1024_v44, %v1023_v9  ;;  %v282_v0 = vrot.slane %v125_v35, 1  ;;  %v118_v1 = vunpack.c.l.b16 %v46_v55  ;;  %v61_v2 = vld [vmem:[%s1490_s0 + $0x44] sm:$0x3]  ;;  %v987_v9 = vld [vmem:[%s1490_s0] sm:$0xe] }
  0x11   :  { %229 = vrot.lane.b32.xlu0 %v164_v48, %s1060_s9  ;;  %v171_v62 = vor.u32 %v170_v56, %v166_v49  ;;  %v200_v3 = vsel %vm128_vm2, %v195_v53, %v199_v54  ;;  %v204_v4 = vshll.u32 %v1170_v57, 16  ;;  %v130_v5 = vshrl.u32 %v1162_v52, 16  ;;  %v986_v11 = vld [vmem:[%s1490_s0] sm:$0xf0]  ;;  %v56_v16 = vld [vmem:[%s1490_s0 + $0x8] sm:$0x3] }
  0x12   :  { %v281_v6 = vrot.slane %v1025_v63, 1  ;;  %v1184_v10 = vpack.c.b16 %v118_v1, %v118_v1  ;;  %v134_v12 = vrot.slane %v132_v61, 1  ;;  %v137_v13 = vshll.u32 %v1175_v60, 16  ;;  %v995_v21 = vld [vmem:[%s1490_s0 + $0x48] sm:$0xf0]  ;;  %v1226_v49 = vld [vmem:[%s1490_s0 + $0x30] sm:$0xff]  }
  0x13   :  { %v319_v14 = vunpack.c.l.b16 %v61_v2  ;;  %v417_v15 = vshrl.u32 %v1025_v63, 16  ;;  %v176_v17 = vsel %vm128_vm2, %v171_v62, %v175_v58  ;;  %v275_v18 = vrot.slane %v1173_v59, 1  ;;  %v996_v26 = vld [vmem:[%s1490_s0 + $0x48] sm:$0xe]  ;;  %v44_v32 = vld [vmem:[%s1490_s0 + $0x38] sm:$0x1] }
  0x14   :  { %v276_v19 = vrot.slane %v1148_v43, 1  ;;  %v283_v20 = vsel %vm265_vm0, %v281_v6, %v282_v0  ;;  %v202_v22 = vshrl.u32 %v1170_v57, 16  ;;  %v206_v23 = vrot.slane %v204_v4, 1  ;;  %v59_v44 = vld [vmem:[%s1490_s0 + $0x2c] sm:$0x3]  ;;  %s1061_s24 = smov [#allocation2]  }
  0x15   :  { %300 = vrot.lane.b32.xlu2 %v283_v20, %s1058_s19  ;;  %v209_v24 = vshll.u32 %v1184_v10, 16  ;;  %v327_v27 = vpack.c.b16 %v319_v14, %v319_v14  ;;  %v419_v28 = vrot.slane %v417_v15, 1  ;;  %v420_v29 = vshll.u32 %v1025_v63, 16  ;;  %v1244_v6 = vld [vmem:[%s1490_s0 + $0xc] sm:$0xff]   ;;  %v1260_v20 = vld [vmem:[%s1490_s0 + $0x54] sm:$0xff]   ;;  %s876_s25 = sshll.u32 %s1061_s24, 4  ;;  %s877_s25 = int_to_ptr.vmem [resolvable:$true] %s876_s25 }
  0x16   :  { %235 = vrot.lane.b32.xlu1 %v200_v3, %s1060_s9  ;;  %v1210_v30 = vor.u32 %v987_v9, %v986_v11  ;;  %v314_v31 = vunpack.c.l.b16 %v56_v16  ;;  %v135_v33 = vor.u32 %v134_v12, %v130_v5  ;;  %v139_v34 = vrot.slane %v137_v13, 1  ;;  %s878_s28 = sshll.u32 %s1496_s6, 4  ;;  %s879_s28 = int_to_ptr.hbm [resolvable:$true] %s878_s28 }
  0x17   :  { %v425_v35 = vshrl.u32 %v327_v27, 16  ;;  %v428_v36 = vshll.u32 %v327_v27, 16  ;;  %v1216_v37 = vor.u32 %v996_v26, %v995_v21  ;;  %v422_v38 = vrot.slane %v420_v29, 2  ;;  %v1265_v21 = vld [vmem:[%s1490_s0 + $0x54] sm:$0xf0] }
  0x18   :  { %v322_v39 = vpack.c.b16 %v314_v31, %v314_v31  ;;  %v277_v40 = vsel %vm265_vm0, %v275_v18, %v276_v19  ;;  %v116_v43 = vunpack.c.l.b16 %v44_v32  ;;  %v207_v45 = vor.u32 %v206_v23, %v202_v22  ;;  %v992_v26 = vld [vmem:[%s1490_s0 + $0x30] sm:$0xf0]  ;;  %v993_v27 = vld [vmem:[%s1490_s0 + $0x30] sm:$0xe] }
  0x19   :  { %231 = vrot.lane.b32.xlu0 %v176_v17, %s1060_s9  ;;  %v427_v41 = vrot.slane %v425_v35, 1  ;;  %v430_v42 = vrot.slane %v428_v36, 2  ;;  %v211_v46 = vrot.slane %v209_v24, 1  ;;  %v423_v47 = vor.u32 %v422_v38, %v419_v28 }
  0x1a   :  { %v332_v48 = vshrl.u32 %v1210_v30, 16  ;;  %v140_v50 = vsel %vm128_vm2, %v135_v33, %v139_v34  ;;  %v335_v53 = vshll.u32 %v1210_v30, 16  ;;  %v340_v54 = vshrl.u32 %v322_v39, 16  ;;  %v47_v33 = vld [vmem:[%s1490_s0 + $0x5c] sm:$0x1] }
  0x1b   :  { %v431_v51 = vor.u32 %v430_v42, %v427_v41  ;;  %v284_v55 = vrot.slane %v1216_v37, 1  ;;  %v285_v56 = vrot.slane %v1184_v10, 1  ;;  %v343_v58 = vshll.u32 %v322_v39, 16  ;;  %v1249_v10 = vld [vmem:[%s1490_s0 + $0xc] sm:$0xf0] }
  0x1c   :  { %v317_v61 = vunpack.c.l.b16 %v59_v44  ;;  %v1234_v63 = vpack.c.b16 %v116_v43, %v116_v43  ;;  %v180_v0 = vshll.u32 %v1226_v49, 16  ;;  %v383_v1 = vshrl.u32 %v1173_v59, 16  ;;  %v62_v34 = vld [vmem:[%s1490_s0 + $0x50] sm:$0x3] }
  0x1d   :  { %v432_v62 = vsel %vm330_vm1, %v423_v47, %v431_v51  ;;  %v212_v2 = vsel %vm128_vm2, %v207_v45, %v211_v46  ;;  %v334_v3 = vrot.slane %v332_v48, 1  ;;  %v386_v5 = vshll.u32 %v1173_v59, 16  ;;  %v41_v59 = vld [vmem:[%s1490_s0 + $0x14] sm:$0x1] }
  0x1e   :  { %296 = vrot.lane.b32.xlu1 %v277_v40, %s1058_s19  ;;  %477 = vrot.lane.b32.xlu2 %v432_v62, %s1059_s26  ;;  %v325_v4 = vpack.c.b16 %v317_v61, %v317_v61  ;;  %v337_v11 = vrot.slane %v335_v53, 2  ;;  %v342_v9 = vrot.slane %v340_v54, 1  ;;  %v178_v12 = vshrl.u32 %v1226_v49, 16  ;;  %v60_v62 = vld [vmem:[%s1490_s0 + $0x38] sm:$0x3] }
  0x1f   :  { %v385_v13 = vrot.slane %v383_v1, 1  ;;  %v345_v14 = vrot.slane %v343_v58, 2  ;;  %v388_v15 = vrot.slane %v386_v5, 2  ;;  %v182_v18 = vrot.slane %v180_v0, 1  ;;  %v1030_v1 = vld [vmem:[%s1490_s0 + $0x54] sm:$0xe] }
  0x20   :  { %v391_v16 = vshrl.u32 %v325_v4, 16  ;;  %v394_v17 = vshll.u32 %v325_v4, 16  ;;  %v185_v19 = vshll.u32 %v1234_v63, 16  ;;  %v113_v28 = vunpack.c.l.b16 %v41_v59 }
  0x21   :  { %225 = vrot.lane.b32.xlu0 %v140_v50, %s1060_s9  ;;  %v389_v22 = vor.u32 %v388_v15, %v385_v13  ;;  %v286_v29 = vsel %vm265_vm0, %v284_v55, %v285_v56  ;;  %v338_v31 = vor.u32 %v337_v11, %v334_v3  ;;  %v346_v35 = vor.u32 %v345_v14, %v342_v9  ;;  %v1027_v55 = vld [vmem:[%s1490_s0 + $0xc] sm:$0xe]  ;;  %v57_v56 = vld [vmem:[%s1490_s0 + $0x14] sm:$0x3] }
  0x22   :  { %v393_v23 = vrot.slane %v391_v16, 1  ;;  %v396_v24 = vrot.slane %v394_v17, 2  ;;  %v183_v36 = vor.u32 %v182_v18, %v178_v12  ;;  %v187_v38 = vrot.slane %v185_v19, 1 }
  0x23   :  { %v1281_v39 = vor.u32 %v993_v27, %v992_v26  ;;  %v1284_v41 = vpack.c.b16 %v113_v28, %v113_v28  ;;  %v144_v42 = vshll.u32 %v1244_v6, 16  ;;  %v119_v43 = vunpack.c.l.b16 %v47_v33 }
  0x24   :  { %v397_v32 = vor.u32 %v396_v24, %v393_v23  ;;  %v320_v44 = vunpack.c.l.b16 %v62_v34  ;;  %v279_v45 = vrot.slane %v1234_v63, 1  ;;  %v266_v46 = vrot.slane %v1210_v30, 1 }
  0x25   :  { %v267_v47 = vrot.slane %v1175_v60, 1  ;;  %v434_v48 = vshrl.u32 %v1216_v37, 16  ;;  %v347_v50 = vsel %vm330_vm1, %v338_v31, %v346_v35  ;;  %v188_v51 = vsel %vm128_vm2, %v183_v36, %v187_v38  ;;  %v957_v31 = vld [vmem:[%s1491_s1 + $0x30] sm:$0xff] }
  0x26   :  { %237 = vrot.lane.b32.xlu1 %v212_v2, %s1060_s9  ;;  %v398_v40 = vsel %vm330_vm1, %v389_v22, %v397_v32  ;;  %v278_v53 = vrot.slane %v1281_v39, 1  ;;  %v328_v54 = vpack.c.b16 %v320_v44, %v320_v44  ;;  %v142_v30 = vshrl.u32 %v1244_v6, 16  ;;  %v958_v22 = vld [vmem:[%s1491_s1 + $0x38] sm:$0xff] }
  0x27   :  { %473 = vrot.lane.b32.xlu2 %v398_v40, %s1059_s26  ;;  %v146_v60 = vrot.slane %v144_v42, 1  ;;  %v149_v58 = vshll.u32 %v1284_v41, 16  ;;  %v437_v61 = vshll.u32 %v1216_v37, 16  ;;  %v1308_v63 = vpack.c.b16 %v119_v43, %v119_v43  ;;  %998 = vmatpush.bf16.msra.mxu2 %v958_v22 }
  0x28   :  { %v216_v0 = vshll.u32 %v1260_v20, 16  ;;  %v442_v2 = vshrl.u32 %v328_v54, 16  ;;  %v445_v3 = vshll.u32 %v328_v54, 16  ;;  %v268_v4 = vsel %vm265_vm0, %v266_v46, %v267_v47  ;;  %999 = vmatpush.bf16.msra.mxu3 %v958_v22  ;;  %610 = vmatpush.bf16.msra.mxu0 %v958_v22 }
  0x29   :  { %302 = vrot.lane.b32.xlu0 %v286_v29, %s1058_s19  ;;  %v436_v5 = vrot.slane %v434_v48, 1  ;;  %v439_v37 = vrot.slane %v437_v61, 2  ;;  %v315_v12 = vunpack.c.l.b16 %v57_v56  ;;  %v318_v13 = vunpack.c.l.b16 %v60_v62  ;;  %v956_v48 = vld [vmem:[%s1491_s1 + $0x28] sm:$0xff]  ;;  %v955_v62 = vld [vmem:[%s1491_s1 + $0x20] sm:$0xff] }
  0x2a   :  { %v444_v11 = vrot.slane %v442_v2, 1  ;;  %v447_v9 = vrot.slane %v445_v3, 2  ;;  %v147_v59 = vor.u32 %v146_v60, %v142_v30  ;;  %v151_v14 = vrot.slane %v149_v58, 1 }
  0x2b   :  { %v214_v15 = vshrl.u32 %v1260_v20, 16  ;;  %v218_v16 = vrot.slane %v216_v0, 1  ;;  %v221_v17 = vshll.u32 %v1308_v63, 16  ;;  %v326_v18 = vpack.c.b16 %v318_v13, %v318_v13  ;;  %1000 = vmatpush.bf16.msra.mxu2 %v957_v31 }
  0x2c   :  { %v400_v19 = vshrl.u32 %v1281_v39, 16  ;;  %v440_v23 = vor.u32 %v439_v37, %v436_v5  ;;  %v448_v24 = vor.u32 %v447_v9, %v444_v11  ;;  %v403_v26 = vshll.u32 %v1281_v39, 16  ;;  %1001 = vmatpush.bf16.msra.mxu3 %v957_v31  ;;  %611 = vmatpush.bf16.msra.mxu0 %v957_v31 }
  0x2d   :  { %v280_v27 = vsel %vm265_vm0, %v278_v53, %v279_v45  ;;  %v1327_v28 = vor.u32 %v1027_v55, %v1249_v10  ;;  %v323_v29 = vpack.c.b16 %v315_v12, %v315_v12  ;;  %v1333_v32 = vor.u32 %v1030_v1, %v1265_v21  ;;  %v63_v21 = vld [vmem:[%s1490_s0 + $0x5c] sm:$0x3] }
  0x2e   :  { %467 = vrot.lane.b32.xlu1 %v347_v50, %s1059_s26  ;;  %v408_v33 = vshrl.u32 %v326_v18, 16  ;;  %v411_v34 = vshll.u32 %v326_v18, 16  ;;  %v152_v35 = vsel %vm128_vm2, %v147_v59, %v151_v14  ;;  %v219_v36 = vor.u32 %v218_v16, %v214_v15 }
  0x2f   :  { %290 = vrot.lane.b32.xlu2 %v268_v4, %s1058_s19  ;;  %v223_v38 = vrot.slane %v221_v17, 1  ;;  %v402_v39 = vrot.slane %v400_v19, 1  ;;  %v449_v10 = vsel %vm330_vm1, %v440_v23, %v448_v24  ;;  %v405_v40 = vrot.slane %v403_v26, 2  ;;  %1002 = vmatpush.bf16.msra.mxu2 %v956_v48  ;;  %v954_v4 = vld [vmem:[%s1491_s1 + $0x18] sm:$0xff]  ;;  %v953_v23 = vld [vmem:[%s1491_s1 + $0x10] sm:$0xff]  ;;  %v952_v24 = vld [vmem:[%s1491_s1 + $0x8] sm:$0xff] }
  0x30   :  { %v410_v42 = vrot.slane %v408_v33, 1  ;;  %v413_v43 = vrot.slane %v411_v34, 2  ;;  %v349_v44 = vshrl.u32 %v1327_v28, 16  ;;  %v352_v45 = vshll.u32 %v1327_v28, 16  ;;  %1003 = vmatpush.bf16.msra.mxu3 %v956_v48  ;;  %612 = vmatpush.bf16.msra.mxu0 %v956_v48  ;;  %v951_v26 = vld [vmem:[%s1491_s1] sm:$0xff] }
  0x31   :  { %233 = vrot.lane.b32.xlu0 %v188_v51, %s1060_s9  ;;  %v357_v46 = vshrl.u32 %v323_v29, 16  ;;  %v360_v47 = vshll.u32 %v323_v29, 16  ;;  %v287_v50 = vrot.slane %v1333_v32, 1  ;;  %v288_v51 = vrot.slane %v1308_v63, 1 }
  0x32   :  { %v224_v53 = vsel %vm128_vm2, %v219_v36, %v223_v38  ;;  %v406_v54 = vor.u32 %v405_v40, %v402_v39  ;;  %v414_v55 = vor.u32 %v413_v43, %v410_v42  ;;  %v321_v56 = vunpack.c.l.b16 %v63_v21 }
  0x33   :  { %v351_v30 = vrot.slane %v349_v44, 1  ;;  %v354_v60 = vrot.slane %v352_v45, 2  ;;  %v359_v58 = vrot.slane %v357_v46, 1  ;;  %v362_v61 = vrot.slane %v360_v47, 2  ;;  %1004 = vmatpush.bf16.msra.mxu2 %v955_v62 }
  0x34   :  { %v289_v63 = vsel %vm265_vm0, %v287_v50, %v288_v51  ;;  %v415_v0 = vsel %vm330_vm1, %v406_v54, %v414_v55  ;;  %v329_v1 = vpack.c.b16 %v321_v56, %v321_v56  ;;  %1005 = vmatpush.bf16.msra.mxu3 %v955_v62  ;;  %613 = vmatpush.bf16.msra.mxu0 %v955_v62  ;;  %v269_v5 = vrot.slane %v1327_v28, 1 }
  0x35   :  { %v355_v2 = vor.u32 %v354_v60, %v351_v30  ;;  %v363_v3 = vor.u32 %v362_v61, %v359_v58  ;;  %v270_v37 = vrot.slane %v1284_v41, 1  ;;  %v451_v11 = vshrl.u32 %v1333_v32, 16 }
  0x36   :  { %298 = vrot.lane.b32.xlu1 %v280_v27, %s1058_s19  ;;  %v454_v9 = vshll.u32 %v1333_v32, 16  ;;  %v459_v12 = vshrl.u32 %v329_v1, 16  ;;  %v462_v13 = vshll.u32 %v329_v1, 16  ;;  %vm483_vm3 = vcmask 261120  }
  0x37   :  { %479 = vrot.lane.b32.xlu2 %v449_v10, %s1059_s26  ;;  %v364_v59 = vsel %vm330_vm1, %v355_v2, %v363_v3  ;;  %1006 = vmatpush.bf16.msra.mxu2 %v954_v4  ;;  %v271_v14 = vsel %vm265_vm0, %v269_v5, %v270_v37  ;;  %v453_v15 = vrot.slane %v451_v11, 1  ;;  %vm500_vm4 = vcmask 523264  }
  0x38   :  { %1007 = vmatpush.bf16.msra.mxu3 %v954_v4  ;;  %614 = vmatpush.bf16.msra.mxu0 %v954_v4  ;;  %v456_v16 = vrot.slane %v454_v9, 2  ;;  %v461_v17 = vrot.slane %v459_v12, 1  ;;  %v464_v18 = vrot.slane %v462_v13, 2  ;;  %vm517_vm5 = vcmask 785408  }
  0x39   :  { %227 = vrot.lane.b32.xlu0 %v152_v35, %s1060_s9  ;;  %vm793_vm6 = vcmask 1041409   ;;  %vm795_vm7 = vcmask 1042434   ;;  %vm797_vm8 = vcmask 1043459   ;;  %vm799_vm9 = vcmask 1044484  }
  0x3a   :  { %v457_v41 = vor.u32 %v456_v16, %v453_v15  ;;  %v465_v19 = vor.u32 %v464_v18, %v461_v17  ;;  %v966_v16 = vld [vmem:[%s1494_s4 + $0x38] sm:$0xff]  ;;  %v965_v17 = vld [vmem:[%s1494_s4 + $0x30] sm:$0xff]  ;;  %vm801_vm10 = vcmask 1045509   ;;  %vm803_vm11 = vcmask 1046534  }
  0x3b   :  { %1008 = vmatpush.bf16.msra.mxu2 %v953_v23  ;;  %857 = vmatpush.bf16.msra.mxu1 %v966_v16  ;;  %vm805_vm12 = vcmask 1047559  }
  0x3c   :  { %v466_v22 = vsel %vm330_vm1, %v457_v41, %v465_v19  ;;  %1009 = vmatpush.bf16.msra.mxu3 %v953_v23  ;;  %615 = vmatpush.bf16.msra.mxu0 %v953_v23  ;;  %v1422_v19 = vld [vmem:[%s1492_s2] ss:$0 sm:$0xff] }
  0x3e   :  { %239 = vrot.lane.b32.xlu1 %v224_v53, %s1060_s9 }
  0x3f   :  { %475 = vrot.lane.b32.xlu2 %v415_v0, %s1059_s26  ;;  %1010 = vmatpush.bf16.msra.mxu2 %v952_v24 }
  0x40   :  { %1011 = vmatpush.bf16.msra.mxu3 %v952_v24  ;;  %616 = vmatpush.bf16.msra.mxu0 %v952_v24 }
  0x41   :  { %304 = vrot.lane.b32.xlu0 %v289_v63, %s1058_s19  ;;  %858 = vmatpush.bf16.msra.mxu1 %v965_v17 }
  0x43   :  { %1012 = vmatpush.bf16.msra.mxu2 %v951_v26 }
  0x44   :  { %1013 = vmatpush.bf16.msra.mxu3 %v951_v26  ;;  %617 = vmatpush.bf16.msra.mxu0 %v951_v26 }
  0x46   :  { %469 = vrot.lane.b32.xlu1 %v364_v59, %s1059_s26 }
  0x47   :  { %292 = vrot.lane.b32.xlu2 %v271_v14, %s1058_s19 }
  0x4f   :  { %481 = vrot.lane.b32.xlu2 %v466_v22, %s1059_s26  ;;  %v964_v22 = vld [vmem:[%s1494_s4 + $0x28] sm:$0xff] }
  0x50   :  { %859 = vmatpush.bf16.msra.mxu1 %v964_v22 }
  0x6f   :  { %v301_v27 = vpop.permute.xlu2 %300 }
  0x78   :  { %v478_v28 = vpop.permute.xlu2 %477 }
  0x7b   :  { %v295_v29 = vpop.permute.xlu0 %294 }
  0x80   :  { %v472_v31 = vpop.permute.xlu1 %471 }
  0x81   :  { %v474_v33 = vpop.permute.xlu2 %473 }
  0x83   :  { %v230_v32 = vpop.permute.xlu0 %229 }
  0x84   :  { %v489_v34 = vsel %vm483_vm3, %v1112_v7, %v230_v32 }
  0x85   :  { %v506_v35 = vsel %vm500_vm4, %v489_v34, %v295_v29  ;;  %v963_v29 = vld [vmem:[%s1494_s4 + $0x20] sm:$0xff] }
  0x86   :  { %v525_v36 = vsel %vm517_vm5, %v506_v35, %v472_v31  ;;  %860 = vmatpush.bf16.msra.mxu1 %v963_v29 }
  0x87   :  { %628 = vmatmul.bf16.vlgmr.msra.gmra.mxu2 %v525_v36 }
  0x88   :  { %v236_v38 = vpop.permute.xlu1 %235 }
  0x89   :  { %v495_v39 = vsel %vm483_vm3, %v1117_v8, %v236_v38  ;;  %v291_v43 = vpop.permute.xlu2 %290 }
  0x8a   :  { %v512_v10 = vsel %vm500_vm4, %v495_v39, %v301_v27 }
  0x8b   :  { %v534_v40 = vsel %vm517_vm5, %v512_v10, %v478_v28  ;;  %v232_v42 = vpop.permute.xlu0 %231  ;;  %v1442_v10 = vld [vmem:[%s1493_s3 + $0x8] sm:$0xff] }
  0x8c   :  { %643 = vmatmul.bf16.vlgmr.msra.gmra.mxu3 %v534_v40  ;;  %v491_v21 = vsel %vm483_vm3, %v1130_v25, %v232_v42 }
  0x90   :  { %v297_v7 = vpop.permute.xlu1 %296 }
  0x91   :  { %v508_v44 = vsel %vm500_vm4, %v491_v21, %v297_v7  ;;  %v480_v46 = vpop.permute.xlu2 %479 }
  0x92   :  { %v528_v47 = vsel %vm517_vm5, %v508_v44, %v474_v33 }
  0x93   :  { %v226_v45 = vpop.permute.xlu0 %225 }
  0x94   :  { %v485_v53 = vsel %vm483_vm3, %v1162_v52, %v226_v45  ;;  %v1451_v45 = vld [vmem:[%s1493_s3] sm:$0xff] }
  0x95   :  { %v502_v55 = vsel %vm500_vm4, %v485_v53, %v291_v43  ;;  %v962_v43 = vld [vmem:[%s1494_s4 + $0x18] sm:$0xff] }
  0x96   :  { %861 = vmatpush.bf16.msra.mxu1 %v962_v43 }
  0x97   :  { %633 = vmatmul.bf16.gmra.mxu2 %v528_v47 }
  0x98   :  { %v238_v48 = vpop.permute.xlu1 %237 }
  0x99   :  { %v497_v8 = vsel %vm483_vm3, %v1170_v57, %v238_v48  ;;  %v476_v54 = vpop.permute.xlu2 %475 }
  0x9b   :  { %v303_v50 = vpop.permute.xlu0 %302 }
  0x9c   :  { %v514_v51 = vsel %vm500_vm4, %v497_v8, %v303_v50 }
  0x9d   :  { %v537_v25 = vsel %vm517_vm5, %v514_v51, %v480_v46 }
  0x9e   :  { %648 = vmatmul.bf16.gmra.mxu3 %v537_v25 }
  0xa0   :  { %v468_v56 = vpop.permute.xlu1 %467 }
  0xa1   :  { %v519_v30 = vsel %vm517_vm5, %v502_v55, %v468_v56  ;;  %v293_v61 = vpop.permute.xlu2 %292 }
  0xa2   :  { %618 = vmatmul.bf16.vlgmr.msra.gmra.mxu0 %v519_v30 }
  0xa3   :  { %v234_v60 = vpop.permute.xlu0 %233 }
  0xa4   :  { %v493_v57 = vsel %vm483_vm3, %v1226_v49, %v234_v60 }
  0xa8   :  { %v299_v58 = vpop.permute.xlu1 %298 }
  0xa9   :  { %v510_v62 = vsel %vm500_vm4, %v493_v57, %v299_v58  ;;  %v482_v1 = vpop.permute.xlu2 %481 }
  0xaa   :  { %v531_v52 = vsel %vm517_vm5, %v510_v62, %v476_v54  ;;  %v961_v54 = vld [vmem:[%s1494_s4 + $0x10] sm:$0xff]  ;;  %v960_v62 = vld [vmem:[%s1494_s4 + $0x8] sm:$0xff] }
  0xab   :  { %638 = vmatmul.bf16.gmra.mxu2 %v531_v52  ;;  %v228_v63 = vpop.permute.xlu0 %227  ;;  %862 = vmatpush.bf16.msra.mxu1 %v961_v54 }
  0xac   :  { %v487_v5 = vsel %vm483_vm3, %v1244_v6, %v228_v63 }
  0xad   :  { %v504_v37 = vsel %vm500_vm4, %v487_v5, %v293_v61 }
  0xaf   :  { %863 = vmatpush.bf16.msra.mxu1 %v960_v62 }
  0xb0   :  { %v240_v0 = vpop.permute.xlu1 %239 }
  0xb1   :  { %v499_v2 = vsel %vm483_vm3, %v1260_v20, %v240_v0 }
  0xb3   :  { %v305_v3 = vpop.permute.xlu0 %304 }
  0xb4   :  { %v516_v4 = vsel %vm500_vm4, %v499_v2, %v305_v3 }
  0xb5   :  { %v540_v49 = vsel %vm517_vm5, %v516_v4, %v482_v1 }
  0xb6   :  { %653 = vmatmul.bf16.gmra.mxu3 %v540_v49 }
  0xb8   :  { %v470_v11 = vpop.permute.xlu1 %469 }
  0xb9   :  { %v522_v9 = vsel %vm517_vm5, %v504_v37, %v470_v11 }
  0xba   :  { %623 = vmatmul.bf16.gmra.mxu0 %v522_v9  ;;  %v959_v9 = vld [vmem:[%s1494_s4] sm:$0xff] }
  0xbb   :  { %864 = vmatpush.bf16.msra.mxu1 %v959_v9 }
 0x10a   :  { %v629_v12 = vpop.f32.mrf.mxu2 }
 0x10b   :  { %v630_v31 = vadd.f32 %v1422_v19, %v629_v12 }
 0x10d   :  { %v663_v21 = vmax.f32 %v630_v31, 0.0 }
 0x10f   :  { %v644_v13 = vpop.f32.mrf.mxu3  ;;  %v681_v55 = vmul.f32 %v1451_v45, %v663_v21 }
 0x110   :  { %v645_v33 = vadd.f32 %v1422_v19, %v644_v13 }
 0x112   :  { %v631_v59 = vpop.f32.mrf.mxu2  ;;  %v669_v46 = vmax.f32 %v645_v33, 0.0 }
 0x113   :  { %v632_v24 = vadd.f32 %v1422_v19, %v631_v59 }
 0x114   :  { %v687_v60 = vmul.f32 %v1451_v45, %v669_v46 }
 0x115   :  { %v664_v38 = vmax.f32 %v632_v24, 0.0 }
 0x117   :  { %v646_v14 = vpop.f32.mrf.mxu3  ;;  %v682_v8 = vmul.f32 %v1442_v10, %v664_v38 }
 0x118   :  { %v647_v32 = vadd.f32 %v1422_v19, %v646_v14 }
 0x119   :  { %v707_v52 = vmax.f32 %v681_v55, %v682_v8 }
 0x11a   :  { %v634_v20 = vpop.f32.mrf.mxu2  ;;  %v670_v7 = vmax.f32 %v647_v32, 0.0 }
 0x11b   :  { %v635_v34 = vadd.f32 %v1422_v19, %v634_v20  ;;  %v708_v12 = vrot.slane %v707_v52, 4 }
 0x11c   :  { %v688_v56 = vmul.f32 %v1442_v10, %v670_v7 }
 0x11d   :  { %v665_v47 = vmax.f32 %v635_v34, 0.0 }
 0x11e   :  { %v728_v4 = vmax.f32 %v687_v60, %v688_v56 }
 0x11f   :  { %v619_v15 = vpop.f32.mrf.mxu0  ;;  %v683_v57 = vmul.f32 %v1451_v45, %v665_v47 }
 0x120   :  { %v620_v26 = vadd.f32 %v1422_v19, %v619_v15  ;;  %v729_v16 = vrot.slane %v728_v4, 4 }
 0x121   :  { %v649_v6 = vpop.f32.mrf.mxu3 }
 0x122   :  { %v636_v18 = vpop.f32.mrf.mxu2  ;;  %v659_v40 = vmax.f32 %v620_v26, 0.0  ;;  %v650_v44 = vadd.f32 %v1422_v19, %v649_v6  ;;  %v730_v29 = vmax.f32 %v728_v4, %v729_v16 }
 0x123   :  { %v637_v27 = vadd.f32 %v1422_v19, %v636_v18 }
 0x124   :  { %v677_v53 = vmul.f32 %v1451_v45, %v659_v40  ;;  %v671_v30 = vmax.f32 %v650_v44, 0.0  ;;  %v731_v7 = vrot.slane %v730_v29, 2 }
 0x125   :  { %v666_v42 = vmax.f32 %v637_v27, 0.0 }
 0x126   :  { %v689_v5 = vmul.f32 %v1451_v45, %v671_v30  ;;  %v732_v55 = vmax.f32 %v730_v29, %v731_v7 }
 0x127   :  { %v621_v41 = vpop.f32.mrf.mxu0  ;;  %v684_v25 = vmul.f32 %v1442_v10, %v666_v42 }
 0x128   :  { %v622_v23 = vadd.f32 %v1422_v19, %v621_v41  ;;  %v709_v41 = vmax.f32 %v707_v52, %v708_v12 }
 0x129   :  { %v651_v28 = vpop.f32.mrf.mxu3  ;;  %v714_v3 = vmax.f32 %v683_v57, %v684_v25 }
 0x12a   :  { %v660_v35 = vmax.f32 %v622_v23, 0.0  ;;  %v652_v39 = vadd.f32 %v1422_v19, %v651_v28  ;;  %v710_v38 = vrot.slane %v709_v41, 2 }
 0x12b   :  { %v715_v20 = vrot.slane %v714_v3, 4 }
 0x12c   :  { %v678_v48 = vmul.f32 %v1442_v10, %v660_v35  ;;  %v672_v50 = vmax.f32 %v652_v39, 0.0 }
 0x12d   :  { %v716_v26 = vmax.f32 %v714_v3, %v715_v20 }
 0x12e   :  { %v639_v36 = vpop.f32.mrf.mxu2  ;;  %v693_v58 = vmax.f32 %v677_v53, %v678_v48  ;;  %v690_v63 = vmul.f32 %v1442_v10, %v672_v50  ;;  %v711_v50 = vmax.f32 %v709_v41, %v710_v38 }
 0x12f   :  { %v640_v51 = vadd.f32 %v1422_v19, %v639_v36  ;;  %v717_v40 = vrot.slane %v716_v26, 2 }
 0x130   :  { %v694_v11 = vrot.slane %v693_v58, 4  ;;  %v735_v13 = vmax.f32 %v689_v5, %v690_v63  ;;  %v712_v57 = vrot.slane %v711_v50, 1 }
 0x131   :  { %v667_v0 = vmax.f32 %v640_v51, 0.0  ;;  %v718_v53 = vmax.f32 %v716_v26, %v717_v40 }
 0x132   :  { %v695_v17 = vmax.f32 %v693_v58, %v694_v11  ;;  %v736_v22 = vrot.slane %v735_v13, 4 }
 0x133   :  { %v685_v59 = vmul.f32 %v1451_v45, %v667_v0 }
 0x134   :  { %v696_v33 = vrot.slane %v695_v17, 2  ;;  %v737_v39 = vmax.f32 %v735_v13, %v736_v22 }
 0x136   :  { %v641_v61 = vpop.f32.mrf.mxu2  ;;  %v697_v46 = vmax.f32 %v695_v17, %v696_v33  ;;  %v738_v51 = vrot.slane %v737_v39, 2 }
 0x137   :  { %v642_v1 = vadd.f32 %v1422_v19, %v641_v61  ;;  %v624_v2 = vpop.f32.mrf.mxu0  ;;  %v719_v61 = vrot.slane %v718_v53, 1 }
 0x138   :  { %v625_v15 = vadd.f32 %v1422_v19, %v624_v2  ;;  %v698_v56 = vrot.slane %v697_v46, 1  ;;  %v739_v58 = vmax.f32 %v737_v39, %v738_v51  ;;  %v713_v2 = vmax.f32 %v711_v50, %v712_v57 }
 0x139   :  { %v668_v49 = vmax.f32 %v642_v1, 0.0  ;;  %v654_v37 = vpop.f32.mrf.mxu3  ;;  %v720_v4 = vmax.f32 %v718_v53, %v719_v61 }
 0x13a   :  { %v655_v18 = vadd.f32 %v1422_v19, %v654_v37  ;;  %v661_v27 = vmax.f32 %v625_v15, 0.0  ;;  %v699_v0 = vmax.f32 %v697_v46, %v698_v56  ;;  %v740_v3 = vrot.slane %v739_v58, 1 }
 0x13b   :  { %v686_v14 = vmul.f32 %v1442_v10, %v668_v49  ;;  %v752_v20 = vpack.c.bf16 %v720_v4, %v720_v4 }
 0x13c   :  { %v673_v34 = vmax.f32 %v655_v18, 0.0  ;;  %v679_v42 = vmul.f32 %v1451_v45, %v661_v27  ;;  %v749_v9 = vpack.c.bf16 %v699_v0, %v699_v0 }
 0x13d   :  { %v721_v6 = vmax.f32 %v685_v59, %v686_v14  ;;  %v751_v59 = vpack.c.bf16 %v713_v2, %v713_v2  ;;  %v741_v14 = vmax.f32 %v739_v58, %v740_v3 }
 0x13e   :  { %v691_v47 = vmul.f32 %v1451_v45, %v673_v34  ;;  %v733_v45 = vrot.slane %v732_v55, 1  ;;  %v785_v17 = vunpack.c.l.b16 %v749_v9 }
 0x13f   :  { %v722_v23 = vrot.slane %v721_v6, 4  ;;  %v626_v24 = vpop.f32.mrf.mxu0  ;;  %v787_v22 = vunpack.c.l.b16 %v751_v59 }
 0x140   :  { %v627_v28 = vadd.f32 %v1422_v19, %v626_v24  ;;  %v734_v11 = vmax.f32 %v732_v55, %v733_v45  ;;  %v788_v24 = vunpack.c.l.b16 %v752_v20 }
 0x141   :  { %v723_v31 = vmax.f32 %v721_v6, %v722_v23  ;;  %v656_v32 = vpop.f32.mrf.mxu3  ;;  %v755_v23 = vpack.c.bf16 %v741_v14, %v741_v14 }
 0x142   :  { %v662_v35 = vmax.f32 %v627_v28, 0.0  ;;  %v657_v36 = vadd.f32 %v1422_v19, %v656_v32  ;;  %v754_v41 = vpack.c.bf16 %v734_v11, %v734_v11 }
 0x143   :  { %v724_v44 = vrot.slane %v723_v31, 2  ;;  %v791_v33 = vunpack.c.l.b16 %v755_v23 }
 0x144   :  { %v680_v43 = vmul.f32 %v1442_v10, %v662_v35  ;;  %v674_v21 = vmax.f32 %v657_v36, 0.0 }
 0x145   :  { %v725_v54 = vmax.f32 %v723_v31, %v724_v44  ;;  %v790_v31 = vunpack.c.l.b16 %v754_v41 }
 0x146   :  { %v700_v48 = vmax.f32 %v679_v42, %v680_v43  ;;  %v692_v8 = vmul.f32 %v1442_v10, %v674_v21  ;;  %v1019_v42 = vld [vmem:[%s1495_s5] ss:$0 sm:$0xff] }
 0x147   :  { %v726_v63 = vrot.slane %v725_v54, 1 }
 0x148   :  { %v701_v19 = vrot.slane %v700_v48, 4  ;;  %v742_v25 = vmax.f32 %v691_v47, %v692_v8 }
 0x149   :  { %v727_v37 = vmax.f32 %v725_v54, %v726_v63 }
 0x14a   :  { %v702_v30 = vmax.f32 %v700_v48, %v701_v19  ;;  %v743_v60 = vrot.slane %v742_v25, 4 }
 0x14b   :  { %v753_v6 = vpack.c.bf16 %v727_v37, %v727_v37 }
 0x14c   :  { %v703_v62 = vrot.slane %v702_v30, 2  ;;  %v744_v52 = vmax.f32 %v742_v25, %v743_v60 }
 0x14d   :  { %v789_v28 = vunpack.c.l.b16 %v753_v6 }
 0x14e   :  { %v704_v1 = vmax.f32 %v702_v30, %v703_v62  ;;  %v745_v10 = vrot.slane %v744_v52, 2 }
 0x150   :  { %v705_v5 = vrot.slane %v704_v1, 1  ;;  %v746_v49 = vmax.f32 %v744_v52, %v745_v10 }
 0x152   :  { %v706_v12 = vmax.f32 %v704_v1, %v705_v5  ;;  %v747_v13 = vrot.slane %v746_v49, 1 }
 0x154   :  { %v750_v15 = vpack.c.bf16 %v706_v12, %v706_v12  ;;  %v748_v16 = vmax.f32 %v746_v49, %v747_v13 }
 0x156   :  { %v786_v18 = vunpack.c.l.b16 %v750_v15  ;;  %v756_v26 = vpack.c.bf16 %v748_v16, %v748_v16 }
 0x158   :  { %v794_v27 = vsel %vm793_vm6, %v786_v18, %v785_v17  ;;  %v792_v35 = vunpack.c.l.b16 %v756_v26 }
 0x159   :  { %v796_v29 = vsel %vm795_vm7, %v787_v22, %v794_v27 }
 0x15a   :  { %v798_v32 = vsel %vm797_vm8, %v788_v24, %v796_v29 }
 0x15b   :  { %v800_v34 = vsel %vm799_vm9, %v789_v28, %v798_v32 }
 0x15c   :  { %v802_v36 = vsel %vm801_vm10, %v790_v31, %v800_v34 }
 0x15d   :  { %v804_v38 = vsel %vm803_vm11, %v791_v33, %v802_v36 }
 0x15e   :  { %v806_v39 = vsel %vm805_vm12, %v792_v35, %v804_v38 }
 0x15f   :  { %v807_v40 = vpack.c.b16 %v806_v39, %v806_v39 }
 0x161   :  { %865 = vmatmul.bf16.vlgmr.msra.gmra.mxu1 %v807_v40 }
 0x1de   :  { %v866_v43 = vpop.f32.mrf.mxu1 }
 0x1df   :  { %v867_v21 = vadd.f32 %v1019_v42, %v866_v43 }
 0x1e1   :  { %870 = vst [vmem:[#allocation2] sm:$0xff] %v867_v21 }
 0x1e2   :  { %881 = dma.vmem_to_hbm [thread:$0]  %s877_s25, 128, %s879_s28, [#allocation3]  }
 0x1e6   :  { %v868_v7 = vpop.f32.mrf.mxu1 }
 0x1e7   :  { %1056 = dma.done.wait [#allocation3], 128  }
 0x1e8   :  { %1057 = vsyncadd [#allocation3], 4294967168 }
 0x1e9   :  { %886 = vsyncpa [#allocation3], 1 }

</bundles_post_ra>
